<compile_context>
chip_gen: v6e
topology: v6e:2x2x1
jax: 0.10.0
libtpu: 0.0.40
codegen_flags: <defaults>
</compile_context>

<pallas_src>
import functools

import jax
import jax.numpy as jnp
from jax.experimental import pallas as pl
from jax.experimental.pallas import tpu as pltpu


def _lane_tile(total: int, max_tile: int) -> int:
    """Full extent if it fits, else a lane-dense multiple of 128."""
    if total <= max_tile:
        return total
    return max(128, (max_tile // 128) * 128)


# ----------------------------------------------------------------------------
# Kernel 1: fused graph diffusion
#   hops[s*order + k] = (A_s^T)^(k+1) @ X  for every support s and hop k.
# ----------------------------------------------------------------------------
def _diffusion_kernel(at_ref, x_ref, o_ref, *, support_len, order):
    # at_ref: (S, N, N)       stacked A^T, VMEM-resident (constant index_map)
    # x_ref : (N, LT)         node-major tile of x, lanes = chunk of (c, b, t)
    # o_ref : (S*order, N, LT)
    x0 = x_ref[...]
    for s in range(support_len):
        at = at_ref[s]                       # static leading-dim slice (free)
        xk = x0
        for k in range(order):
            xk = jnp.dot(at, xk, preferred_element_type=jnp.float32).astype(o_ref.dtype)
            o_ref[s * order + k] = xk        # hop never round-trips HBM between hops


def diffusion_pallas(x_nm, at_all, order, *, max_lane_tile=1024):
    """x_nm: [N, M] node-major, at_all: [S, N, N] -> hops [S*order, N, M]."""
    S = at_all.shape[0]
    N, M = x_nm.shape
    lt = _lane_tile(M, max_lane_tile)
    so = S * order
    kern = functools.partial(_diffusion_kernel, support_len=S, order=order)
    return pl.pallas_call(
        kern,
        out_shape=jax.ShapeDtypeStruct((so, N, M), x_nm.dtype),
        grid_spec=pltpu.PrefetchScalarGridSpec(
            num_scalar_prefetch=0,
            grid=(pl.cdiv(M, lt),),
            in_specs=[
                pl.BlockSpec((S, N, N), lambda j: (0, 0, 0)),   # resident across steps
                pl.BlockSpec((N, lt), lambda j: (0, j)),
            ],
            out_specs=pl.BlockSpec((so, N, lt), lambda j: (0, 0, j)),
        ),
        compiler_params=pltpu.CompilerParams(
            dimension_semantics=("parallel",),
            vmem_limit_bytes=32 * 1024 * 1024,
        ),
    )(at_all, x_nm)


# ----------------------------------------------------------------------------
# Kernel 2: fused concat + 1x1 conv (channel mixing), no h buffer in HBM.
#   y[n] = W0 @ x[n] + sum_i Wh[i] @ hops[i, n] + bias
# ----------------------------------------------------------------------------
def _mix_kernel(x_ref, h_ref, w0_ref, wh_ref, b_ref, o_ref, *, num_hops):
    # x_ref : (1, C, LT)          original features at node n
    # h_ref : (SO, 1, C, LT)      diffusion hops at node n
    # w0_ref: (C_out, C), wh_ref: (SO, C_out, C), b_ref: (C_out, 1)
    # o_ref : (1, C_out, LT)
    acc = jnp.dot(w0_ref[...], x_ref[0], preferred_element_type=jnp.float32)
    for i in range(num_hops):
        acc = acc + jnp.dot(wh_ref[i], h_ref[i, 0], preferred_element_type=jnp.float32)
    o_ref[0] = (acc + b_ref[...]).astype(o_ref.dtype)


def mix_pallas(x5, hops4, w0, wh, bias_col, out_dtype, *, max_lane_tile=2048):
    """x5: [N, C, BT], hops4: [SO, N, C, BT] -> y: [N, C_out, BT]."""
    so, N, C, BT = hops4.shape
    C_out = w0.shape[0]
    lt = _lane_tile(BT, max_lane_tile)
    kern = functools.partial(_mix_kernel, num_hops=so)
    return pl.pallas_call(
        kern,
        out_shape=jax.ShapeDtypeStruct((N, C_out, BT), out_dtype),
        grid_spec=pltpu.PrefetchScalarGridSpec(
            num_scalar_prefetch=0,
            grid=(N, pl.cdiv(BT, lt)),
            in_specs=[
                pl.BlockSpec((1, C, lt), lambda n, j: (n, 0, j)),
                pl.BlockSpec((so, 1, C, lt), lambda n, j: (0, n, 0, j)),
                pl.BlockSpec((C_out, C), lambda n, j: (0, 0)),
                pl.BlockSpec((so, C_out, C), lambda n, j: (0, 0, 0)),
                pl.BlockSpec((C_out, 1), lambda n, j: (0, 0)),
            ],
            out_specs=pl.BlockSpec((1, C_out, lt), lambda n, j: (n, 0, j)),
        ),
        compiler_params=pltpu.CompilerParams(
            dimension_semantics=("parallel", "parallel"),
            vmem_limit_bytes=32 * 1024 * 1024,
        ),
    )(x5, hops4, w0, wh, bias_col)


# ----------------------------------------------------------------------------
# gcn forward (matches the PyTorch module's forward pass, eval mode)
# ----------------------------------------------------------------------------
def gcn_forward(x, supports, W, bias, order=2, compute_dtype=jnp.bfloat16):
    B, C, N, T = x.shape
    S = len(supports)
    C_out, C_cat = W.shape
    assert C_cat == (order * S + 1) * C

    # Hoisted glue (once per forward): stacked A^T, node-major x views, split W.
    at_all = jnp.stack([a.T for a in supports]).astype(compute_dtype)     # (S, N, N)
    x_t = jnp.transpose(x, (2, 1, 0, 3))                                  # (N, C, B, T)
    x_nm = x_t.reshape(N, C * B * T).astype(compute_dtype)                # diffusion view
    x5 = x_t.reshape(N, C, B * T).astype(compute_dtype)                   # mixing view

    w0 = W[:, :C].astype(compute_dtype)                                   # block for x
    wh = W[:, C:].reshape(C_out, S * order, C)
    wh = jnp.transpose(wh, (1, 0, 2)).astype(compute_dtype)               # (SO, C_out, C)
    bias_col = bias.reshape(C_out, 1).astype(jnp.float32)

    hops = diffusion_pallas(x_nm, at_all, order)                          # (SO, N, C*B*T)
    hops4 = hops.reshape(S * order, N, C, B * T)                          # free split of lanes

    y3 = mix_pallas(x5, hops4, w0, wh, bias_col, out_dtype=x.dtype)       # (N, C_out, B*T)
    y = jnp.transpose(y3.reshape(N, C_out, B, T), (2, 1, 0, 3))           # (B, C_out, N, T)
    # F.dropout with training=False -> identity.
    # TODO(synk): training-mode dropout (PRNG mask) not implemented.
    return y


# ----------------------------------------------------------------------------
# Pure-JAX f32 reference for verification
# ----------------------------------------------------------------------------
def gcn_reference(x, supports, W, bias, order=2):
    out = [x]
    for a in supports:
        x1 = jnp.einsum('ncvl,vw->ncwl', x, a)
        out.append(x1)
        for _ in range(2, order + 1):
            x2 = jnp.einsum('ncvl,vw->ncwl', x1, a)
            out.append(x2)
            x1 = x2
    h = jnp.concatenate(out, axis=1)
    return jnp.einsum('oi,bivl->bovl', W, h) + bias[None, :, None, None]


if __name__ == "__main__":
    B, C_IN, N, T = 2, 4, 16, 16
    SUPPORT_LEN, ORDER = 3, 2
    C_OUT = 8
    C_CAT = (ORDER * SUPPORT_LEN + 1) * C_IN   # = 28

    key = jax.random.PRNGKey(0)
    kx, ks, kw, kb = jax.random.split(key, 4)

    x = jax.random.normal(kx, (B, C_IN, N, T), dtype=jnp.float32)

    # Deterministic row-normalized adjacency-like support matrices.
    sup_keys = jax.random.split(ks, SUPPORT_LEN)
    supports = []
    for sk in sup_keys:
        a = jax.random.uniform(sk, (N, N), dtype=jnp.float32)
        supports.append(a / jnp.sum(a, axis=1, keepdims=True))

    W = jax.random.normal(kw, (C_OUT, C_CAT), dtype=jnp.float32) * 0.1
    bias = jax.random.normal(kb, (C_OUT,), dtype=jnp.float32) * 0.1

    gcn_fn = jax.jit(functools.partial(gcn_forward, order=ORDER))
    y = jax.block_until_ready(gcn_fn(x, supports, W, bias))

    y_ref = gcn_reference(x, supports, W, bias, order=ORDER)
    assert y.shape == (B, C_OUT, N, T), y.shape
    max_err = float(jnp.max(jnp.abs(y - y_ref)))
    # bf16 streamed operands with f32 accumulation -> relaxed tolerance vs f32 reference.
    assert max_err < 5e-2, max_err

    print("KERNEL_OK")
</pallas_src>

<mosaic_0001>
module attributes {stable_mosaic.version = 11 : i64} {
  func.func @_diffusion_kernel(%arg0: i32, %arg1: memref<3x16x16xbf16, #tpu.memory_space<vmem>>, %arg2: memref<16x128xbf16, #tpu.memory_space<vmem>>, %arg3: memref<6x16x128xbf16, #tpu.memory_space<vmem>>) attributes {dimension_semantics = [#tpu.dimension_semantics<parallel>], iteration_bounds = array<i64: 1>, scalar_prefetch = 0 : i64, scratch_operands = 0 : i64, tpu.core_type = #tpu.core_type<tc>, window_params = [{pipeline_mode = #tpu.pipeline_mode<synchronous>, transform_indices = @transform_0, window_bounds = array<i64: 3, 16, 16>}, {transform_indices = @transform_1, window_bounds = array<i64: 16, 128>}, {transform_indices = @transform_2, window_bounds = array<i64: 6, 16, 128>}]} {
    %c0 = arith.constant 0 : index
    %c0_0 = arith.constant 0 : index
    %0 = vector.load %arg2[%c0, %c0_0] : memref<16x128xbf16, #tpu.memory_space<vmem>>, vector<16x128xbf16>
    %c0_1 = arith.constant 0 : index
    %c0_2 = arith.constant 0 : index
    %c0_3 = arith.constant 0 : index
    %1 = vector.load %arg1[%c0_1, %c0_2, %c0_3] : memref<3x16x16xbf16, #tpu.memory_space<vmem>>, vector<1x16x16xbf16>
    %2 = vector.shape_cast %1 : vector<1x16x16xbf16> to vector<16x16xbf16>
    %cst = arith.constant dense<0.000000e+00> : vector<16x128xf32>
    %3 = tpu.matmul %2, %0, %cst {dimension_numbers = #tpu.dot_dimension_numbers<[1], [0], [0], [1], [0, 0, 1, 1], [], []>} : vector<16x16xbf16>, vector<16x128xbf16>, vector<16x128xf32> -> vector<16x128xf32>
    %4 = arith.truncf %3 : vector<16x128xf32> to vector<16x128xbf16>
    %c0_4 = arith.constant 0 : index
    %c0_5 = arith.constant 0 : index
    %c0_6 = arith.constant 0 : index
    %5 = vector.load %arg3[%c0_4, %c0_5, %c0_6] : memref<6x16x128xbf16, #tpu.memory_space<vmem>>, vector<1x16x128xbf16>
    %6 = vector.shape_cast %5 : vector<1x16x128xbf16> to vector<16x128xbf16>
    %7 = vector.shape_cast %4 : vector<16x128xbf16> to vector<1x16x128xbf16>
    tpu.vector_store %arg3[%c0_4, %c0_5, %c0_6], %7 {strides = array<i32>} : memref<6x16x128xbf16, #tpu.memory_space<vmem>>, vector<1x16x128xbf16>,
    %cst_7 = arith.constant dense<0.000000e+00> : vector<16x128xf32>
    %8 = tpu.matmul %2, %4, %cst_7 {dimension_numbers = #tpu.dot_dimension_numbers<[1], [0], [0], [1], [0, 0, 1, 1], [], []>} : vector<16x16xbf16>, vector<16x128xbf16>, vector<16x128xf32> -> vector<16x128xf32>
    %9 = arith.truncf %8 : vector<16x128xf32> to vector<16x128xbf16>
    %c1 = arith.constant 1 : index
    %c0_8 = arith.constant 0 : index
    %c0_9 = arith.constant 0 : index
    %10 = vector.load %arg3[%c1, %c0_8, %c0_9] : memref<6x16x128xbf16, #tpu.memory_space<vmem>>, vector<1x16x128xbf16>
    %11 = vector.shape_cast %10 : vector<1x16x128xbf16> to vector<16x128xbf16>
    %12 = vector.shape_cast %9 : vector<16x128xbf16> to vector<1x16x128xbf16>
    tpu.vector_store %arg3[%c1, %c0_8, %c0_9], %12 {strides = array<i32>} : memref<6x16x128xbf16, #tpu.memory_space<vmem>>, vector<1x16x128xbf16>,
    %c1_10 = arith.constant 1 : index
    %c0_11 = arith.constant 0 : index
    %c0_12 = arith.constant 0 : index
    %13 = vector.load %arg1[%c1_10, %c0_11, %c0_12] : memref<3x16x16xbf16, #tpu.memory_space<vmem>>, vector<1x16x16xbf16>
    %14 = vector.shape_cast %13 : vector<1x16x16xbf16> to vector<16x16xbf16>
    %cst_13 = arith.constant dense<0.000000e+00> : vector<16x128xf32>
    %15 = tpu.matmul %14, %0, %cst_13 {dimension_numbers = #tpu.dot_dimension_numbers<[1], [0], [0], [1], [0, 0, 1, 1], [], []>} : vector<16x16xbf16>, vector<16x128xbf16>, vector<16x128xf32> -> vector<16x128xf32>
    %16 = arith.truncf %15 : vector<16x128xf32> to vector<16x128xbf16>
    %c2 = arith.constant 2 : index
    %c0_14 = arith.constant 0 : index
    %c0_15 = arith.constant 0 : index
    %17 = vector.load %arg3[%c2, %c0_14, %c0_15] : memref<6x16x128xbf16, #tpu.memory_space<vmem>>, vector<1x16x128xbf16>
    %18 = vector.shape_cast %17 : vector<1x16x128xbf16> to vector<16x128xbf16>
    %19 = vector.shape_cast %16 : vector<16x128xbf16> to vector<1x16x128xbf16>
    tpu.vector_store %arg3[%c2, %c0_14, %c0_15], %19 {strides = array<i32>} : memref<6x16x128xbf16, #tpu.memory_space<vmem>>, vector<1x16x128xbf16>,
    %cst_16 = arith.constant dense<0.000000e+00> : vector<16x128xf32>
    %20 = tpu.matmul %14, %16, %cst_16 {dimension_numbers = #tpu.dot_dimension_numbers<[1], [0], [0], [1], [0, 0, 1, 1], [], []>} : vector<16x16xbf16>, vector<16x128xbf16>, vector<16x128xf32> -> vector<16x128xf32>
    %21 = arith.truncf %20 : vector<16x128xf32> to vector<16x128xbf16>
    %c3 = arith.constant 3 : index
    %c0_17 = arith.constant 0 : index
    %c0_18 = arith.constant 0 : index
    %22 = vector.load %arg3[%c3, %c0_17, %c0_18] : memref<6x16x128xbf16, #tpu.memory_space<vmem>>, vector<1x16x128xbf16>
    %23 = vector.shape_cast %22 : vector<1x16x128xbf16> to vector<16x128xbf16>
    %24 = vector.shape_cast %21 : vector<16x128xbf16> to vector<1x16x128xbf16>
    tpu.vector_store %arg3[%c3, %c0_17, %c0_18], %24 {strides = array<i32>} : memref<6x16x128xbf16, #tpu.memory_space<vmem>>, vector<1x16x128xbf16>,
    %c2_19 = arith.constant 2 : index
    %c0_20 = arith.constant 0 : index
    %c0_21 = arith.constant 0 : index
    %25 = vector.load %arg1[%c2_19, %c0_20, %c0_21] : memref<3x16x16xbf16, #tpu.memory_space<vmem>>, vector<1x16x16xbf16>
    %26 = vector.shape_cast %25 : vector<1x16x16xbf16> to vector<16x16xbf16>
    %cst_22 = arith.constant dense<0.000000e+00> : vector<16x128xf32>
    %27 = tpu.matmul %26, %0, %cst_22 {dimension_numbers = #tpu.dot_dimension_numbers<[1], [0], [0], [1], [0, 0, 1, 1], [], []>} : vector<16x16xbf16>, vector<16x128xbf16>, vector<16x128xf32> -> vector<16x128xf32>
    %28 = arith.truncf %27 : vector<16x128xf32> to vector<16x128xbf16>
    %c4 = arith.constant 4 : index
    %c0_23 = arith.constant 0 : index
    %c0_24 = arith.constant 0 : index
    %29 = vector.load %arg3[%c4, %c0_23, %c0_24] : memref<6x16x128xbf16, #tpu.memory_space<vmem>>, vector<1x16x128xbf16>
    %30 = vector.shape_cast %29 : vector<1x16x128xbf16> to vector<16x128xbf16>
    %31 = vector.shape_cast %28 : vector<16x128xbf16> to vector<1x16x128xbf16>
    tpu.vector_store %arg3[%c4, %c0_23, %c0_24], %31 {strides = array<i32>} : memref<6x16x128xbf16, #tpu.memory_space<vmem>>, vector<1x16x128xbf16>,
    %cst_25 = arith.constant dense<0.000000e+00> : vector<16x128xf32>
    %32 = tpu.matmul %26, %28, %cst_25 {dimension_numbers = #tpu.dot_dimension_numbers<[1], [0], [0], [1], [0, 0, 1, 1], [], []>} : vector<16x16xbf16>, vector<16x128xbf16>, vector<16x128xf32> -> vector<16x128xf32>
    %33 = arith.truncf %32 : vector<16x128xf32> to vector<16x128xbf16>
    %c5 = arith.constant 5 : index
    %c0_26 = arith.constant 0 : index
    %c0_27 = arith.constant 0 : index
    %34 = vector.load %arg3[%c5, %c0_26, %c0_27] : memref<6x16x128xbf16, #tpu.memory_space<vmem>>, vector<1x16x128xbf16>
    %35 = vector.shape_cast %34 : vector<1x16x128xbf16> to vector<16x128xbf16>
    %36 = vector.shape_cast %33 : vector<16x128xbf16> to vector<1x16x128xbf16>
    tpu.vector_store %arg3[%c5, %c0_26, %c0_27], %36 {strides = array<i32>} : memref<6x16x128xbf16, #tpu.memory_space<vmem>>, vector<1x16x128xbf16>,
    return
  }
  func.func @transform_0(%arg0: i32) -> (i32, i32, i32) {
    %c0_i32 = arith.constant 0 : i32
    %c0_i32_0 = arith.constant 0 : i32
    %c0_i32_1 = arith.constant 0 : i32
    %c0_i32_2 = arith.constant 0 : i32
    return %c0_i32, %c0_i32_0, %c0_i32_1 : i32, i32, i32
  }
  func.func @transform_1(%arg0: i32) -> (i32, i32) {
    %c0_i32 = arith.constant 0 : i32
    %c0_i32_0 = arith.constant 0 : i32
    return %c0_i32, %arg0 : i32, i32
  }
  func.func @transform_2(%arg0: i32) -> (i32, i32, i32) {
    %c0_i32 = arith.constant 0 : i32
    %c0_i32_0 = arith.constant 0 : i32
    %c0_i32_1 = arith.constant 0 : i32
    return %c0_i32, %c0_i32_0, %arg0 : i32, i32, i32
  }
}

module attributes {stable_mosaic.version = 11 : i64} {
  func.func @_mix_kernel(%arg0: i32, %arg1: i32, %arg2: memref<1x4x32xbf16, #tpu.memory_space<vmem>>, %arg3: memref<6x1x4x32xbf16, #tpu.memory_space<vmem>>, %arg4: memref<8x4xbf16, #tpu.memory_space<vmem>>, %arg5: memref<6x8x4xbf16, #tpu.memory_space<vmem>>, %arg6: memref<8x1xf32, #tpu.memory_space<vmem>>, %arg7: memref<1x8x32xf32, #tpu.memory_space<vmem>>) attributes {dimension_semantics = [#tpu.dimension_semantics<parallel>, #tpu.dimension_semantics<parallel>], iteration_bounds = array<i64: 16, 1>, scalar_prefetch = 0 : i64, scratch_operands = 0 : i64, tpu.core_type = #tpu.core_type<tc>, window_params = [{transform_indices = @transform_0, window_bounds = array<i64: 1, 4, 32>}, {transform_indices = @transform_1, window_bounds = array<i64: 6, 1, 4, 32>}, {pipeline_mode = #tpu.pipeline_mode<synchronous>, transform_indices = @transform_2, window_bounds = array<i64: 8, 4>}, {pipeline_mode = #tpu.pipeline_mode<synchronous>, transform_indices = @transform_3, window_bounds = array<i64: 6, 8, 4>}, {pipeline_mode = #tpu.pipeline_mode<synchronous>, transform_indices = @transform_4, window_bounds = array<i64: 8, 1>}, {transform_indices = @transform_5, window_bounds = array<i64: 1, 8, 32>}]} {
    %c0 = arith.constant 0 : index
    %c0_0 = arith.constant 0 : index
    %0 = vector.load %arg4[%c0, %c0_0] : memref<8x4xbf16, #tpu.memory_space<vmem>>, vector<8x4xbf16>
    %c0_1 = arith.constant 0 : index
    %c0_2 = arith.constant 0 : index
    %c0_3 = arith.constant 0 : index
    %1 = vector.load %arg2[%c0_1, %c0_2, %c0_3] : memref<1x4x32xbf16, #tpu.memory_space<vmem>>, vector<1x4x32xbf16>
    %2 = vector.shape_cast %1 : vector<1x4x32xbf16> to vector<4x32xbf16>
    %cst = arith.constant dense<0.000000e+00> : vector<8x32xf32>
    %3 = tpu.matmul %0, %2, %cst {dimension_numbers = #tpu.dot_dimension_numbers<[1], [0], [0], [1], [0, 0, 1, 1], [], []>} : vector<8x4xbf16>, vector<4x32xbf16>, vector<8x32xf32> -> vector<8x32xf32>
    %c0_4 = arith.constant 0 : index
    %c0_5 = arith.constant 0 : index
    %c0_6 = arith.constant 0 : index
    %4 = vector.load %arg5[%c0_4, %c0_5, %c0_6] : memref<6x8x4xbf16, #tpu.memory_space<vmem>>, vector<1x8x4xbf16>
    %5 = vector.shape_cast %4 : vector<1x8x4xbf16> to vector<8x4xbf16>
    %c0_7 = arith.constant 0 : index
    %c0_8 = arith.constant 0 : index
    %c0_9 = arith.constant 0 : index
    %c0_10 = arith.constant 0 : index
    %6 = vector.load %arg3[%c0_7, %c0_8, %c0_9, %c0_10] : memref<6x1x4x32xbf16, #tpu.memory_space<vmem>>, vector<1x1x4x32xbf16>
    %7 = vector.shape_cast %6 : vector<1x1x4x32xbf16> to vector<4x32xbf16>
    %cst_11 = arith.constant dense<0.000000e+00> : vector<8x32xf32>
    %8 = tpu.matmul %5, %7, %cst_11 {dimension_numbers = #tpu.dot_dimension_numbers<[1], [0], [0], [1], [0, 0, 1, 1], [], []>} : vector<8x4xbf16>, vector<4x32xbf16>, vector<8x32xf32> -> vector<8x32xf32>
    %9 = arith.addf %3, %8 : vector<8x32xf32>
    %c1 = arith.constant 1 : index
    %c0_12 = arith.constant 0 : index
    %c0_13 = arith.constant 0 : index
    %10 = vector.load %arg5[%c1, %c0_12, %c0_13] : memref<6x8x4xbf16, #tpu.memory_space<vmem>>, vector<1x8x4xbf16>
    %11 = vector.shape_cast %10 : vector<1x8x4xbf16> to vector<8x4xbf16>
    %c1_14 = arith.constant 1 : index
    %c0_15 = arith.constant 0 : index
    %c0_16 = arith.constant 0 : index
    %c0_17 = arith.constant 0 : index
    %12 = vector.load %arg3[%c1_14, %c0_15, %c0_16, %c0_17] : memref<6x1x4x32xbf16, #tpu.memory_space<vmem>>, vector<1x1x4x32xbf16>
    %13 = vector.shape_cast %12 : vector<1x1x4x32xbf16> to vector<4x32xbf16>
    %cst_18 = arith.constant dense<0.000000e+00> : vector<8x32xf32>
    %14 = tpu.matmul %11, %13, %cst_18 {dimension_numbers = #tpu.dot_dimension_numbers<[1], [0], [0], [1], [0, 0, 1, 1], [], []>} : vector<8x4xbf16>, vector<4x32xbf16>, vector<8x32xf32> -> vector<8x32xf32>
    %15 = arith.addf %9, %14 : vector<8x32xf32>
    %c2 = arith.constant 2 : index
    %c0_19 = arith.constant 0 : index
    %c0_20 = arith.constant 0 : index
    %16 = vector.load %arg5[%c2, %c0_19, %c0_20] : memref<6x8x4xbf16, #tpu.memory_space<vmem>>, vector<1x8x4xbf16>
    %17 = vector.shape_cast %16 : vector<1x8x4xbf16> to vector<8x4xbf16>
    %c2_21 = arith.constant 2 : index
    %c0_22 = arith.constant 0 : index
    %c0_23 = arith.constant 0 : index
    %c0_24 = arith.constant 0 : index
    %18 = vector.load %arg3[%c2_21, %c0_22, %c0_23, %c0_24] : memref<6x1x4x32xbf16, #tpu.memory_space<vmem>>, vector<1x1x4x32xbf16>
    %19 = vector.shape_cast %18 : vector<1x1x4x32xbf16> to vector<4x32xbf16>
    %cst_25 = arith.constant dense<0.000000e+00> : vector<8x32xf32>
    %20 = tpu.matmul %17, %19, %cst_25 {dimension_numbers = #tpu.dot_dimension_numbers<[1], [0], [0], [1], [0, 0, 1, 1], [], []>} : vector<8x4xbf16>, vector<4x32xbf16>, vector<8x32xf32> -> vector<8x32xf32>
    %21 = arith.addf %15, %20 : vector<8x32xf32>
    %c3 = arith.constant 3 : index
    %c0_26 = arith.constant 0 : index
    %c0_27 = arith.constant 0 : index
    %22 = vector.load %arg5[%c3, %c0_26, %c0_27] : memref<6x8x4xbf16, #tpu.memory_space<vmem>>, vector<1x8x4xbf16>
    %23 = vector.shape_cast %22 : vector<1x8x4xbf16> to vector<8x4xbf16>
    %c3_28 = arith.constant 3 : index
    %c0_29 = arith.constant 0 : index
    %c0_30 = arith.constant 0 : index
    %c0_31 = arith.constant 0 : index
    %24 = vector.load %arg3[%c3_28, %c0_29, %c0_30, %c0_31] : memref<6x1x4x32xbf16, #tpu.memory_space<vmem>>, vector<1x1x4x32xbf16>
    %25 = vector.shape_cast %24 : vector<1x1x4x32xbf16> to vector<4x32xbf16>
    %cst_32 = arith.constant dense<0.000000e+00> : vector<8x32xf32>
    %26 = tpu.matmul %23, %25, %cst_32 {dimension_numbers = #tpu.dot_dimension_numbers<[1], [0], [0], [1], [0, 0, 1, 1], [], []>} : vector<8x4xbf16>, vector<4x32xbf16>, vector<8x32xf32> -> vector<8x32xf32>
    %27 = arith.addf %21, %26 : vector<8x32xf32>
    %c4 = arith.constant 4 : index
    %c0_33 = arith.constant 0 : index
    %c0_34 = arith.constant 0 : index
    %28 = vector.load %arg5[%c4, %c0_33, %c0_34] : memref<6x8x4xbf16, #tpu.memory_space<vmem>>, vector<1x8x4xbf16>
    %29 = vector.shape_cast %28 : vector<1x8x4xbf16> to vector<8x4xbf16>
    %c4_35 = arith.constant 4 : index
    %c0_36 = arith.constant 0 : index
    %c0_37 = arith.constant 0 : index
    %c0_38 = arith.constant 0 : index
    %30 = vector.load %arg3[%c4_35, %c0_36, %c0_37, %c0_38] : memref<6x1x4x32xbf16, #tpu.memory_space<vmem>>, vector<1x1x4x32xbf16>
    %31 = vector.shape_cast %30 : vector<1x1x4x32xbf16> to vector<4x32xbf16>
    %cst_39 = arith.constant dense<0.000000e+00> : vector<8x32xf32>
    %32 = tpu.matmul %29, %31, %cst_39 {dimension_numbers = #tpu.dot_dimension_numbers<[1], [0], [0], [1], [0, 0, 1, 1], [], []>} : vector<8x4xbf16>, vector<4x32xbf16>, vector<8x32xf32> -> vector<8x32xf32>
    %33 = arith.addf %27, %32 : vector<8x32xf32>
    %c5 = arith.constant 5 : index
    %c0_40 = arith.constant 0 : index
    %c0_41 = arith.constant 0 : index
    %34 = vector.load %arg5[%c5, %c0_40, %c0_41] : memref<6x8x4xbf16, #tpu.memory_space<vmem>>, vector<1x8x4xbf16>
    %35 = vector.shape_cast %34 : vector<1x8x4xbf16> to vector<8x4xbf16>
    %c5_42 = arith.constant 5 : index
    %c0_43 = arith.constant 0 : index
    %c0_44 = arith.constant 0 : index
    %c0_45 = arith.constant 0 : index
    %36 = vector.load %arg3[%c5_42, %c0_43, %c0_44, %c0_45] : memref<6x1x4x32xbf16, #tpu.memory_space<vmem>>, vector<1x1x4x32xbf16>
    %37 = vector.shape_cast %36 : vector<1x1x4x32xbf16> to vector<4x32xbf16>
    %cst_46 = arith.constant dense<0.000000e+00> : vector<8x32xf32>
    %38 = tpu.matmul %35, %37, %cst_46 {dimension_numbers = #tpu.dot_dimension_numbers<[1], [0], [0], [1], [0, 0, 1, 1], [], []>} : vector<8x4xbf16>, vector<4x32xbf16>, vector<8x32xf32> -> vector<8x32xf32>
    %39 = arith.addf %33, %38 : vector<8x32xf32>
    %c0_47 = arith.constant 0 : index
    %c0_48 = arith.constant 0 : index
    %40 = vector.load %arg6[%c0_47, %c0_48] : memref<8x1xf32, #tpu.memory_space<vmem>>, vector<8x1xf32>
    %41 = vector.broadcast %40 : vector<8x1xf32> to vector<8x32xf32>
    %42 = arith.addf %39, %41 : vector<8x32xf32>
    %c0_49 = arith.constant 0 : index
    %c0_50 = arith.constant 0 : index
    %c0_51 = arith.constant 0 : index
    %43 = vector.load %arg7[%c0_49, %c0_50, %c0_51] : memref<1x8x32xf32, #tpu.memory_space<vmem>>, vector<1x8x32xf32>
    %44 = vector.shape_cast %43 : vector<1x8x32xf32> to vector<8x32xf32>
    %45 = vector.shape_cast %42 : vector<8x32xf32> to vector<1x8x32xf32>
    tpu.vector_store %arg7[%c0_49, %c0_50, %c0_51], %45 {strides = array<i32>} : memref<1x8x32xf32, #tpu.memory_space<vmem>>, vector<1x8x32xf32>,
    return
  }
  func.func @transform_0(%arg0: i32, %arg1: i32) -> (i32, i32, i32) {
    %c0_i32 = arith.constant 0 : i32
    %c0_i32_0 = arith.constant 0 : i32
    return %arg0, %c0_i32, %arg1 : i32, i32, i32
  }
  func.func @transform_1(%arg0: i32, %arg1: i32) -> (i32, i32, i32, i32) {
    %c0_i32 = arith.constant 0 : i32
    %c0_i32_0 = arith.constant 0 : i32
    %c0_i32_1 = arith.constant 0 : i32
    return %c0_i32, %arg0, %c0_i32_0, %arg1 : i32, i32, i32, i32
  }
  func.func @transform_2(%arg0: i32, %arg1: i32) -> (i32, i32) {
    %c0_i32 = arith.constant 0 : i32
    %c0_i32_0 = arith.constant 0 : i32
    %c0_i32_1 = arith.constant 0 : i32
    return %c0_i32, %c0_i32_0 : i32, i32
  }
  func.func @transform_3(%arg0: i32, %arg1: i32) -> (i32, i32, i32) {
    %c0_i32 = arith.constant 0 : i32
    %c0_i32_0 = arith.constant 0 : i32
    %c0_i32_1 = arith.constant 0 : i32
    %c0_i32_2 = arith.constant 0 : i32
    return %c0_i32, %c0_i32_0, %c0_i32_1 : i32, i32, i32
  }
  func.func @transform_4(%arg0: i32, %arg1: i32) -> (i32, i32) {
    %c0_i32 = arith.constant 0 : i32
    %c0_i32_0 = arith.constant 0 : i32
    %c0_i32_1 = arith.constant 0 : i32
    return %c0_i32, %c0_i32_0 : i32, i32
  }
  func.func @transform_5(%arg0: i32, %arg1: i32) -> (i32, i32, i32) {
    %c0_i32 = arith.constant 0 : i32
    %c0_i32_0 = arith.constant 0 : i32
    return %arg0, %c0_i32, %arg1 : i32, i32, i32
  }
}

</mosaic_0001>

<bundles_post_ra>
// kernel: gcn_forward.2
= control target key start
LH: loop header
LB: loop body
LE: loop exit
PB: predicated region body
PF: predicated region fallthrough
CT: control target
= control target key end

     0   :  { %v505_v0 = vmov 0.0   ;;  %vm506_vm0 = vmmov 0   ;;  %vm27_vm1 = vcmask 130048   ;;  %s564_s1 = inlined_call_operand.vmem [shape: bf16[16,128], index: 1, kind: input, shape index: {}]   ;;  %s565_s0 = inlined_call_operand.vmem [shape: bf16[3,16,16], index: 0, kind: input, shape index: {}]   ;;  %s566_s2 = inlined_call_operand.vmem [shape: bf16[6,16,128], index: 2, kind: output, shape index: {}]  }
   0x1   :  { %463 = vmatprep.subr.bf16.mxu0 %v505_v0  ;;  %v501_v1 = vld [vmem:[%s564_s1] sm:$0xff]   ;;  %465 = vmatprep.mubr.msk.bf16.mxu0 %vm506_vm0, %v505_v0  ;;  %v503_v3 = vld [vmem:[%s565_s0 + $0x8] sm:$0xff]   ;;  %v504_v4 = vld [vmem:[%s565_s0 + $0x10] sm:$0xff]  }
   0x2   :  { %v502_v2 = vld [vmem:[%s565_s0] sm:$0xff]   ;;  %469 = vmatprep.subr.bf16.mxu1 %v505_v0  ;;  %471 = vmatprep.mubr.msk.bf16.mxu1 %vm506_vm0, %v505_v0 }
   0x3   :  { %464 = vmatpush3.bf16.msra.mxu0 %v501_v1 }
   0x4   :  { %475 = vmatprep.subr.bf16.mxu0 %v505_v0 }
   0x6   :  { %466 = vmatmul.mubr.msk.bf16.vlgmr.msra.gmra.mxu0 %vm27_vm1, %v502_v2 }
   0x7   :  { %476 = vmatpush3.bf16.msra.mxu0 %v501_v1  ;;  %477 = vmatprep.mubr.msk.bf16.mxu0 %vm506_vm0, %v505_v0 }
   0x8   :  { %487 = vmatprep.subr.bf16.mxu0 %v505_v0 }
   0xe   :  { %478 = vmatmul.mubr.msk.bf16.vlgmr.msra.gmra.mxu0 %vm27_vm1, %v503_v3 }
   0xf   :  { %488 = vmatpush3.bf16.msra.mxu0 %v501_v1  ;;  %489 = vmatprep.mubr.msk.bf16.mxu0 %vm506_vm0, %v505_v0 }
  0x16   :  { %490 = vmatmul.mubr.msk.bf16.vlgmr.msra.gmra.mxu0 %vm27_vm1, %v504_v4 }
  0xc6   :  { %v65_v5 = vpop.f32.mrf.mxu0 }
  0xc8   :  { %v467_v6 = vpop.f32.mrf.mxu0 }
  0xca   :  { %v68_v7 = vpop.f32.mrf.mxu0 }
  0xcb   :  { %v72_v8 = vpack.c.bf16 %v68_v7, %v65_v5 }
  0xcc   :  { %v468_v9 = vpop.f32.mrf.mxu0 }
  0xcd   :  { %420 = vst [vmem:[%s566_s2] sm:$0xff] %v72_v8   ;;  %470 = vmatpush3.bf16.msra.mxu1 %v72_v8 }
  0xce   :  { %v179_v10 = vpop.f32.mrf.mxu0  ;;  %481 = vmatprep.subr.bf16.mxu1 %v505_v0 }
  0xd0   :  { %472 = vmatmul.mubr.msk.bf16.vlgmr.msra.gmra.mxu1 %vm27_vm1, %v502_v2  ;;  %v479_v11 = vpop.f32.mrf.mxu0 }
  0xd1   :  { %483 = vmatprep.mubr.msk.bf16.mxu1 %vm506_vm0, %v505_v0 }
  0xd2   :  { %v182_v12 = vpop.f32.mrf.mxu0 }
  0xd3   :  { %v186_v13 = vpack.c.bf16 %v182_v12, %v179_v10 }
  0xd4   :  { %v480_v14 = vpop.f32.mrf.mxu0 }
  0xd5   :  { %447 = vst [vmem:[%s566_s2 + $0x10] sm:$0xff] %v186_v13   ;;  %482 = vmatpush3.bf16.msra.mxu1 %v186_v13 }
  0xd6   :  { %v294_v15 = vpop.f32.mrf.mxu0  ;;  %493 = vmatprep.subr.bf16.mxu1 %v505_v0 }
  0xd8   :  { %484 = vmatmul.mubr.msk.bf16.vlgmr.msra.gmra.mxu1 %vm27_vm1, %v503_v3  ;;  %v491_v16 = vpop.f32.mrf.mxu0 }
  0xd9   :  { %495 = vmatprep.mubr.msk.bf16.mxu1 %vm506_vm0, %v505_v0 }
  0xda   :  { %v297_v17 = vpop.f32.mrf.mxu0 }
  0xdb   :  { %v301_v18 = vpack.c.bf16 %v297_v17, %v294_v15 }
  0xdc   :  { %v492_v19 = vpop.f32.mrf.mxu0 }
  0xdd   :  { %449 = vst [vmem:[%s566_s2 + $0x20] sm:$0xff] %v301_v18   ;;  %494 = vmatpush3.bf16.msra.mxu1 %v301_v18 }
  0xe0   :  { %496 = vmatmul.mubr.msk.bf16.vlgmr.msra.gmra.mxu1 %vm27_vm1, %v504_v4 }
 0x190   :  { %v116_v20 = vpop.f32.mrf.mxu1 }
 0x192   :  { %v473_v21 = vpop.f32.mrf.mxu1 }
 0x194   :  { %v119_v22 = vpop.f32.mrf.mxu1 }
 0x195   :  { %v424_v23 = vpack.c.bf16 %v119_v22, %v116_v20 }
 0x196   :  { %v474_v24 = vpop.f32.mrf.mxu1 }
 0x197   :  { %446 = vst [vmem:[%s566_s2 + $0x8] sm:$0xff] %v424_v23  }
 0x198   :  { %v231_v25 = vpop.f32.mrf.mxu1 }
 0x19a   :  { %v485_v26 = vpop.f32.mrf.mxu1 }
 0x19c   :  { %v234_v27 = vpop.f32.mrf.mxu1 }
 0x19d   :  { %v434_v28 = vpack.c.bf16 %v234_v27, %v231_v25 }
 0x19e   :  { %v486_v29 = vpop.f32.mrf.mxu1 }
 0x19f   :  { %448 = vst [vmem:[%s566_s2 + $0x18] sm:$0xff] %v434_v28  }
 0x1a0   :  { %v346_v30 = vpop.f32.mrf.mxu1 }
 0x1a2   :  { %v497_v31 = vpop.f32.mrf.mxu1 }
 0x1a4   :  { %v349_v32 = vpop.f32.mrf.mxu1 }
 0x1a5   :  { %v444_v33 = vpack.c.bf16 %v349_v32, %v346_v30 }
 0x1a6   :  { %v498_v34 = vpop.f32.mrf.mxu1 }
 0x1a7   :  { %450 = vst [vmem:[%s566_s2 + $0x28] sm:$0xff] %v444_v33  }

// kernel: gcn_forward.3
= control target key start
LH: loop header
LB: loop body
LE: loop exit
PB: predicated region body
PF: predicated region fallthrough
CT: control target
= control target key end

     0   :  { %s995_s18 = smov 0   ;;  %s997_s19 = smov 0   ;;  %s1121_s0 = inlined_call_operand.vmem [shape: bf16[16,4,32], index: 0, kind: input, shape index: {}]   ;;  %s1122_s1 = inlined_call_operand.vmem [shape: bf16[6,16,4,32], index: 1, kind: input, shape index: {}]   ;;  %s1123_s2 = inlined_call_operand.vmem [shape: bf16[8,4], index: 2, kind: input, shape index: {}]   ;;  %s1124_s3 = inlined_call_operand.vmem [shape: bf16[6,8,4], index: 3, kind: input, shape index: {}]   ;;  %s1125_s4 = inlined_call_operand.vmem [shape: f32[8,1], index: 4, kind: input, shape index: {}]   ;;  %s1126_s5 = inlined_call_operand.vmem [shape: f32[16,8,32], index: 5, kind: output, shape index: {}]  }
   0x1   :  { %s999_s20 = smov 0   ;;  %s1001_s21 = smov 0  }
   0x2   :  { %s1003_s22 = smov 0  }
   0x3 LB: > { %s27_s23 = sadd.s32 1, %s956_s21  ;;  %p71_p1 = scmp.ne.s32.totalorder %s948_s19, %s944_s18  ;;  %s960_s22 = sphi %s1003_s22, %s15_s22   ;;  %s956_s21 = sphi %s1001_s21, %s1130_s21   ;;  %s952_s20 = sphi %s999_s20, %s1129_s20   ;;  %s948_s19 = sphi %s997_s19, %s1128_s19   ;;  %s944_s18 = sphi %s995_s18, %s1127_s18  }
   0x4   : > { %p29_p0 = scmp.ge.s32.totalorder %s27_s23, 16  ;;  %p72_p2 = scmp.eq.s32.totalorder %s960_s22, 0 }
   0x5   : > { %s64_s25 = sadd.s32 1, %s948_s19  ;;  %p796_p5 = scmp.ge.s32.totalorder %s960_s22, 16 }
   0x6   : > { %s1132_s23 = smov (%p29_p0, %s27_s23), 0  ;;  %p73_p3 = por %p72_p2, %p71_p1 }
   0x7   : > { %s59_s24 = ssub.s32 %s956_s21, %s1132_s23  ;;  %197 = sbr.rel (%p796_p5) target bundleno = 22 (0x16), region = 28 }
   0x8   : > { %p62_p4 = scmp.eq.s32.totalorder %s59_s24, 0 }
   0xa   : > { %s1030_s26 = scalar_select %p62_p4, %s948_s19, %s64_s25  }
   0xc   : > { %210 = sbr.rel (!%p73_p3) target bundleno = 22 (0x16), region = 36  ;;  %s212_s27 = sand.u32 (%p73_p3), 1, %s948_s19  }
   0xd   : > { %s797_s28 = sshll.u32 (%p73_p3), %s956_s21, 1  ;;  %s876_s29 = smul.u32 (%p73_p3), 12, %s212_s27 }
   0xe   : > { %s217_s7 = scalar_lea.vmem (%p73_p3), %s1122_s1, %s797_s28 }
   0xf   : > { %v234_v0 = vld [vmem:[%s217_s7] sm:$0x3] (%p73_p3)  ;;  %s214_s8 = scalar_lea.vmem (%p73_p3), [#allocation2], %s876_s29 }
  0x10   : > { %v236_v1 = vld [vmem:[%s217_s7 + $0x20] sm:$0x3] (%p73_p3)  ;;  %235 = vst [vmem:[%s214_s8] sm:$0x3] (%p73_p3), %v234_v0 }
  0x11   : > { %v238_v2 = vld [vmem:[%s217_s7 + $0x40] sm:$0x3]  ;;  %237 = vst [vmem:[%s214_s8 + $0x2] sm:$0x3] %v236_v1 }
  0x12   : > { %v240_v3 = vld [vmem:[%s217_s7 + $0x60] sm:$0x3]  ;;  %239 = vst [vmem:[%s214_s8 + $0x4] sm:$0x3] %v238_v2 }
  0x13   : > { %v242_v4 = vld [vmem:[%s217_s7 + $0x80] sm:$0x3]  ;;  %241 = vst [vmem:[%s214_s8 + $0x6] sm:$0x3] %v240_v3 }
  0x14   : > { %243 = vst [vmem:[%s214_s8 + $0x8] sm:$0x3] %v242_v4  ;;  %v244_v5 = vld [vmem:[%s217_s7 + $0xa0] sm:$0x3] }
  0x15   : > { %245 = vst [vmem:[%s214_s8 + $0xa] sm:$0x3] %v244_v5 }
  0x16 PF: > { %p798_p6 = scmp.ge.s32.totalorder %s960_s22, 1  ;;  %p280_p7 = scmp.lt.s32.totalorder %s960_s22, 17 }
  0x18   : > { %p281_p8 = pnand %p798_p6, %p280_p7 }
  0x19   : > { %s287_s9 = sand.u32 (!%p281_p8), 1, %s944_s18   ;;  %p323_p9 = scmp.lt.s32.totalorder (!%p281_p8), %s952_s20, 15 }
  0x1a   : > { %284 = sbr.rel (%p281_p8) target bundleno = 260 (0x104), region = 77 }
  0x1b   : > { %s877_s10 = smul.u32 (!%p281_p8), 12, %s287_s9 }
  0x1d   : > { %s1050_s13 = scalar_lea.vmem (!%p281_p8), [#allocation2], %s877_s10 }
  0x1f   : > { %v962_v6 = vmov 0.0   ;;  %vm346_vm0 = vcmask 1041408   ;;  %vm963_vm1 = vmmov 0   ;;  %s1134_s20 = smov (!%p323_p9, %s952_s20), 15  ;;  %v691_v7 = vld [vmem:[%s1125_s4] sm:$0xff]  ;;  %v964_v8 = vmov 0  }
  0x20   : > { %834 = vmatprep.subr.bf16.mxu0 %v962_v6  ;;  %840 = vmatprep.subr.bf16.mxu1 %v962_v6  ;;  %v341_v9 = vld [vmem:[%s1050_s13] sm:$0x3]  ;;  %s799_s14 = sshll.u32 %s1134_s20, 1  ;;  %v804_v10 = vld [vmem:[%s1050_s13 + $0x2] sm:$0x3]  ;;  %vm342_vm2 = vcmask 31744  }
  0x21   : > { %836 = vmatprep.mubr.msk.bf16.mxu0 %vm963_vm1, %v962_v6  ;;  %842 = vmatprep.mubr.msk.bf16.mxu1 %vm963_vm1, %v962_v6  ;;  %v348_v11 = vsel %vm346_vm0, %v341_v9, 0  ;;  %s329_s17 = scalar_lea.vmem %s1121_s0, %s799_s14  ;;  %v340_v13 = vld [vmem:[%s1124_s3] sm:$0xf]  ;;  %v807_v14 = vld [vmem:[%s1050_s13 + $0x4] sm:$0x3]  ;;  %v444_v16 = vsel %vm346_vm0, %v804_v10, 0 }
  0x22   : > { %921 = vset.pattern.permute.xlu0 %v964_v8  ;;  %835 = vmatpush3.bf16.msra.mxu0 %v348_v11  ;;  %v339_v12 = vld [vmem:[%s329_s17] sm:$0x3]  ;;  %v495_v18 = vsel %vm346_vm0, %v807_v14, 0  ;;  %v810_v19 = vld [vmem:[%s1050_s13 + $0x6] sm:$0x3]  ;;  %vm698_vm3 = vcmask 261120  }
  0x23   : > { %694 = vperm.xlu0 %921, %v691_v7   ;;  %v394_v15 = vsel %vm346_vm0, %v339_v12, 0  ;;  %846 = vmatprep.subr.bf16.mxu0 %v962_v6  ;;  %v338_v17 = vld [vmem:[%s1123_s2] sm:$0xf]  ;;  %v803_v20 = vld [vmem:[%s1124_s3 + $0x4] sm:$0xf]  ;;  %v546_v22 = vsel %vm346_vm0, %v810_v19, 0 }
  0x24   : > { %841 = vmatpush3.bf16.msra.mxu1 %v394_v15  ;;  %v813_v21 = vld [vmem:[%s1050_s13 + $0x8] sm:$0x3]  ;;  %v816_v25 = vld [vmem:[%s1050_s13 + $0xa] sm:$0x3]  ;;  %v809_v26 = vld [vmem:[%s1124_s3 + $0xc] sm:$0xf] }
  0x25   : > { %837 = vmatmul.mubr.msk.bf16.vlgmr.msra.gmra.mxu0 %vm342_vm2, %v340_v13  ;;  %852 = vmatprep.subr.bf16.mxu1 %v962_v6  ;;  %v806_v23 = vld [vmem:[%s1124_s3 + $0x8] sm:$0xf]  ;;  %v597_v24 = vsel %vm346_vm0, %v813_v21, 0  ;;  %v648_v27 = vsel %vm346_vm0, %v816_v25, 0  ;;  %v812_v28 = vld [vmem:[%s1124_s3 + $0x10] sm:$0xf] }
  0x26   : > { %847 = vmatpush3.bf16.msra.mxu0 %v444_v16  ;;  %848 = vmatprep.mubr.msk.bf16.mxu0 %vm963_vm1, %v962_v6  ;;  %v815_v29 = vld [vmem:[%s1124_s3 + $0x14] sm:$0xf]  ;;  %s800_s13 = sshll.u32 %s1134_s20, 3 }
  0x27   : > { %843 = vmatmul.mubr.msk.bf16.vlgmr.msra.gmra.mxu1 %vm342_vm2, %v338_v17  ;;  %858 = vmatprep.subr.bf16.mxu0 %v962_v6  ;;  %s336_s16 = scalar_lea.vmem %s1126_s5, %s800_s13 }
  0x28   : > { %853 = vmatpush3.bf16.msra.mxu1 %v495_v18  ;;  %854 = vmatprep.mubr.msk.bf16.mxu1 %vm963_vm1, %v962_v6 }
  0x29   : > { %864 = vmatprep.subr.bf16.mxu1 %v962_v6 }
  0x2d   : > { %849 = vmatmul.mubr.msk.bf16.vlgmr.msra.gmra.mxu0 %vm342_vm2, %v803_v20 }
  0x2e   : > { %859 = vmatpush3.bf16.msra.mxu0 %v546_v22  ;;  %860 = vmatprep.mubr.msk.bf16.mxu0 %vm963_vm1, %v962_v6 }
  0x2f   : > { %855 = vmatmul.mubr.msk.bf16.vlgmr.msra.gmra.mxu1 %vm342_vm2, %v806_v23  ;;  %870 = vmatprep.subr.bf16.mxu0 %v962_v6 }
  0x30   : > { %865 = vmatpush3.bf16.msra.mxu1 %v597_v24  ;;  %866 = vmatprep.mubr.msk.bf16.mxu1 %vm963_vm1, %v962_v6 }
  0x35   : > { %861 = vmatmul.mubr.msk.bf16.vlgmr.msra.gmra.mxu0 %vm342_vm2, %v809_v26 }
  0x36   : > { %871 = vmatpush3.bf16.msra.mxu0 %v648_v27  ;;  %872 = vmatprep.mubr.msk.bf16.mxu0 %vm963_vm1, %v962_v6 }
  0x37   : > { %867 = vmatmul.mubr.msk.bf16.vlgmr.msra.gmra.mxu1 %vm342_vm2, %v812_v28 }
  0x3d   : > { %873 = vmatmul.mubr.msk.bf16.vlgmr.msra.gmra.mxu0 %vm342_vm2, %v815_v29 }
  0x9e   : > { %v695_v58 = vpop.permute.xlu0 %694 }
  0xe5   : > { %v384_v30 = vpop.f32.mrf.mxu0 }
  0xe7   : > { %v838_v31 = vpop.f32.mrf.mxu0  ;;  %v430_v32 = vpop.f32.mrf.mxu1 }
  0xe8   : > { %v431_v41 = vadd.f32 %v430_v32, %v384_v30 }
  0xe9   : > { %v387_v33 = vpop.f32.mrf.mxu0  ;;  %v844_v34 = vpop.f32.mrf.mxu1 }
  0xeb   : > { %v839_v35 = vpop.f32.mrf.mxu0  ;;  %v433_v36 = vpop.f32.mrf.mxu1 }
  0xed   : > { %v845_v37 = vpop.f32.mrf.mxu1  ;;  %v480_v38 = vpop.f32.mrf.mxu0 }
  0xee   : > { %v486_v44 = vadd.f32 %v480_v38, %v431_v41 }
  0xef   : > { %v850_v39 = vpop.f32.mrf.mxu0  ;;  %v531_v40 = vpop.f32.mrf.mxu1 }
  0xf0   : > { %v537_v49 = vadd.f32 %v531_v40, %v486_v44 }
  0xf1   : > { %v483_v42 = vpop.f32.mrf.mxu0  ;;  %v856_v43 = vpop.f32.mrf.mxu1 }
  0xf3   : > { %v851_v45 = vpop.f32.mrf.mxu0  ;;  %v534_v46 = vpop.f32.mrf.mxu1 }
  0xf5   : > { %v857_v47 = vpop.f32.mrf.mxu1  ;;  %v582_v48 = vpop.f32.mrf.mxu0 }
  0xf6   : > { %v588_v52 = vadd.f32 %v582_v48, %v537_v49 }
  0xf7   : > { %v862_v50 = vpop.f32.mrf.mxu0  ;;  %v633_v51 = vpop.f32.mrf.mxu1 }
  0xf8   : > { %v639_v57 = vadd.f32 %v633_v51, %v588_v52 }
  0xf9   : > { %v585_v53 = vpop.f32.mrf.mxu0  ;;  %v868_v54 = vpop.f32.mrf.mxu1 }
  0xfb   : > { %v863_v55 = vpop.f32.mrf.mxu0  ;;  %v636_v56 = vpop.f32.mrf.mxu1 }
  0xfd   : > { %v869_v59 = vpop.f32.mrf.mxu1  ;;  %v684_v60 = vpop.f32.mrf.mxu0 }
  0xfe   : > { %v690_v61 = vadd.f32 %v684_v60, %v639_v57 }
  0xff   : > { %v874_v62 = vpop.f32.mrf.mxu0 }
 0x100   : > { %v697_v63 = vadd.f32 %v695_v58, %v690_v61 }
 0x101   : > { %v687_v0 = vpop.f32.mrf.mxu0 }
 0x102   : > { %699 = vst.msk [vmem:[%s336_s16] sm:$0xff] %vm698_vm3, %v697_v63 }
 0x103   : > { %v875_v1 = vpop.f32.mrf.mxu0 }
 0x104 PF: > { %s15_s22 = sadd.s32 1, %s960_s22   ;;  %s1127_s18 = smov %s948_s19 }
 0x105   : > { %p12_p10 = scmp.ge.s32.totalorder %s15_s22, 18   ;;  %s1128_s19 = smov %s1030_s26 }
 0x106   : > { %s1129_s20 = smov %s956_s21  ;;  %s1130_s21 = smov %s1132_s23 }
 0x107   :  { %14 = sbr.rel (!%p12_p10) target bundleno = 3 (0x3), region = 129 }

</bundles_post_ra>
